<compile_context>
chip_gen: v7x
topology: tpu7x:2x2x1
jax: 0.10.0
libtpu: 0.0.40
codegen_flags: <defaults>
</compile_context>

<pallas_src>
import functools

import jax
import jax.numpy as jnp
from jax.experimental import pallas as pl
from jax.experimental.pallas import tpu as pltpu

EPS = 1e-5


def _lvae_kernel(L,
                 x_ref,
                 we1_ref, be1_ref, we2_ref, be2_ref, we3_ref, be3_ref,
                 wd1_ref, bd1_ref, wd2_ref, bd2_ref, wd3_ref, bd3_ref,
                 aw_ref, ab_ref,
                 xhat_ref, mu_scale_ref):
    Bt, T, D = x_ref.shape
    x = x_ref[...]                                       # (Bt, T, D)

    # ---- RevIN 'norm': per-instance, per-feature stats over the time axis --
    mean = jnp.mean(x, axis=1, keepdims=True)            # (Bt, 1, D)
    var = jnp.mean((x - mean) ** 2, axis=1, keepdims=True)
    stdev = jnp.sqrt(var + EPS)
    xn = (x - mean) / stdev

    # fold batch into the matmul M dimension: (Bt, T, D) -> (Bt*T, D)
    xn = xn.reshape(Bt * T, D)
    xn = xn * aw_ref[...] + ab_ref[...]                  # RevIN affine

    # ---- spatial_encoder MLP (D -> H -> H -> 2L) ---------------------------
    h = jnp.maximum(
        jnp.dot(xn, we1_ref[...], preferred_element_type=jnp.float32)
        + be1_ref[...], 0.0)
    h = jnp.maximum(
        jnp.dot(h, we2_ref[...], preferred_element_type=jnp.float32)
        + be2_ref[...], 0.0)
    mu_lv = (jnp.dot(h, we3_ref[...], preferred_element_type=jnp.float32)
             + be3_ref[...])                             # (BtT, 2L): [0,L)=mu, [L,2L)=lv

    # scale = softplus(lv) applied only on the lv lanes -- no lane slice needed
    lane = jax.lax.broadcasted_iota(jnp.int32, mu_lv.shape, 1)
    mu_scale = jnp.where(lane >= L, jax.nn.softplus(mu_lv), mu_lv)

    # ---- spatial_decoder MLP (L -> H -> H -> D) ----------------------------
    # z = mu (eval-mode mean); wd1 rows [L, 2L) are zero, so feeding mu_lv
    # selects the mu half inside the matmul at zero extra cost.
    h = jnp.maximum(
        jnp.dot(mu_lv, wd1_ref[...], preferred_element_type=jnp.float32)
        + bd1_ref[...], 0.0)
    h = jnp.maximum(
        jnp.dot(h, wd2_ref[...], preferred_element_type=jnp.float32)
        + bd2_ref[...], 0.0)
    xh = (jnp.dot(h, wd3_ref[...], preferred_element_type=jnp.float32)
          + bd3_ref[...])                                # (BtT, D)

    # ---- RevIN 'denorm' -----------------------------------------------------
    xh = (xh - ab_ref[...]) / (aw_ref[...] + EPS * EPS)
    xhat_ref[...] = xh.reshape(Bt, T, D) * stdev + mean
    mu_scale_ref[...] = mu_scale.reshape(Bt, T, 2 * L)


def _pick_b_tile(B, T):
    # Target ~256 matmul rows per block, but keep >= 2 grid steps when B >= 2
    # so v7x's two TensorCores both get work ("parallel" batch axis).
    bt = max(1, min(B, max(1, 256 // max(T, 1))))
    if B >= 2:
        bt = max(1, min(bt, B // 2))
    while B % bt:
        bt -= 1
    return bt


def lvae_forward(x, params, local_size, b_tile=None):
    """x: (B, T, D) float32. Returns dict matching the PyTorch forward."""
    B, T, D = x.shape
    L = local_size
    H = params["we1"].shape[1]
    f32 = jnp.float32

    if b_tile is None:
        b_tile = _pick_b_tile(B, T)
    assert B % b_tile == 0
    grid = (B // b_tile,)

    # wd1: (L, H) -> (2L, H), rows [L, 2L) zero, so the decoder's first matmul
    # consumes mu_lv directly and selects z = mu (no in-kernel lane slice).
    wd1_p = jnp.zeros((2 * L, H), f32).at[:L].set(params["wd1"])

    inputs = (x.astype(f32),
              params["we1"], params["be1"], params["we2"], params["be2"],
              params["we3"], params["be3"],
              wd1_p, params["bd1"], params["wd2"], params["bd2"],
              params["wd3"], params["bd3"],
              params["aw"], params["ab"])

    def resident(arr):   # full array block, constant index_map -> DMA'd once
        nd = arr.ndim
        return pl.BlockSpec(arr.shape, lambda b, _nd=nd: (0,) * _nd)

    in_specs = ([pl.BlockSpec((b_tile, T, D), lambda b: (b, 0, 0))]
                + [resident(a) for a in inputs[1:]])
    out_specs = (pl.BlockSpec((b_tile, T, D), lambda b: (b, 0, 0)),
                 pl.BlockSpec((b_tile, T, 2 * L), lambda b: (b, 0, 0)))

    weight_bytes = 4 * sum(int(a.size) for a in inputs[1:])
    cost = pl.CostEstimate(
        flops=2 * B * T * (D * H + H * H + H * 2 * L + 2 * L * H + H * H + H * D),
        transcendentals=B * T * 2 * L,
        bytes_accessed=4 * (2 * B * T * D + B * T * 2 * L) + weight_bytes)

    xhat, mu_scale = pl.pallas_call(
        functools.partial(_lvae_kernel, L),
        out_shape=(jax.ShapeDtypeStruct((B, T, D), f32),
                   jax.ShapeDtypeStruct((B, T, 2 * L), f32)),
        grid_spec=pltpu.PrefetchScalarGridSpec(
            num_scalar_prefetch=0,
            grid=grid,
            in_specs=in_specs,
            out_specs=out_specs),
        compiler_params=pltpu.CompilerParams(
            dimension_semantics=("parallel",),
            vmem_limit_bytes=32 * 1024 * 1024),
        cost_estimate=cost,
    )(*inputs)

    mu = mu_scale[:, :, :L]
    scale = mu_scale[:, :, L:]
    # PyTorch returns mu/scale with shape (T, B, L) (post x_norm.transpose(1, 0)).
    return {
        "context_dist": None,
        "local_dist": {"mu": jnp.transpose(mu, (1, 0, 2)),
                       "scale": jnp.transpose(scale, (1, 0, 2))},
        "prior_dist": {"mu": jnp.zeros(()), "scale": jnp.ones(())},
        "x_hat": xhat,
        "x_orig": x,
    }


def lvae_reference(x, params, local_size):
    """Pure-JAX reference of the same eval-mode forward pass."""
    L = local_size
    mean = jnp.mean(x, axis=1, keepdims=True)
    var = jnp.mean((x - mean) ** 2, axis=1, keepdims=True)
    stdev = jnp.sqrt(var + EPS)
    xn = (x - mean) / stdev
    xn = xn * params["aw"] + params["ab"]

    h = jax.nn.relu(xn @ params["we1"] + params["be1"])
    h = jax.nn.relu(h @ params["we2"] + params["be2"])
    mu_lv = h @ params["we3"] + params["be3"]
    mu, lv = mu_lv[..., :L], mu_lv[..., L:]
    scale = jax.nn.softplus(lv)
    z = mu

    h = jax.nn.relu(z @ params["wd1"] + params["bd1"])
    h = jax.nn.relu(h @ params["wd2"] + params["bd2"])
    xh = h @ params["wd3"] + params["bd3"]

    xh = (xh - params["ab"]) / (params["aw"] + EPS * EPS)
    xh = xh * stdev + mean
    return xh, mu, scale


def init_params(key, input_size, hidden, local_size):
    ks = jax.random.split(key, 14)

    def lin(k, fan_in, fan_out):
        bound = 1.0 / jnp.sqrt(fan_in)
        return jax.random.uniform(k, (fan_in, fan_out), jnp.float32,
                                  -bound, bound)

    D, H, L = input_size, hidden, local_size
    return {
        # encoder: D -> H -> H -> 2L
        "we1": lin(ks[0], D, H), "be1": lin(ks[1], 1, H) * 0.1,
        "we2": lin(ks[2], H, H), "be2": lin(ks[3], 1, H) * 0.1,
        "we3": lin(ks[4], H, 2 * L), "be3": lin(ks[5], 1, 2 * L) * 0.1,
        # decoder: L -> H -> H -> D
        "wd1": lin(ks[6], L, H), "bd1": lin(ks[7], 1, H) * 0.1,
        "wd2": lin(ks[8], H, H), "bd2": lin(ks[9], 1, H) * 0.1,
        "wd3": lin(ks[10], H, D), "bd3": lin(ks[11], 1, D) * 0.1,
        # RevIN affine (deterministic, non-trivial)
        "aw": 1.0 + 0.1 * jax.random.normal(ks[12], (1, D), jnp.float32),
        "ab": 0.1 * jax.random.normal(ks[13], (1, D), jnp.float32),
    }


if __name__ == "__main__":
    # Small config implied by the module:
    #   input_size=8, local_size=4, context_size=0, window_size=16,
    #   num_layers=2, spatial_hidden_size=32, batch=2
    B, T, D, H, L = 2, 16, 8, 32, 4

    key = jax.random.PRNGKey(0)
    kx, kp = jax.random.split(key)
    x = jax.random.normal(kx, (B, T, D), jnp.float32)
    params = init_params(kp, D, H, L)

    out = lvae_forward(x, params, L)
    jax.block_until_ready(out["x_hat"])

    xh_ref, mu_ref, scale_ref = lvae_reference(x, params, L)
    assert jnp.allclose(out["x_hat"], xh_ref, atol=1e-4, rtol=1e-4)
    assert jnp.allclose(jnp.transpose(out["local_dist"]["mu"], (1, 0, 2)),
                        mu_ref, atol=1e-4, rtol=1e-4)
    assert jnp.allclose(jnp.transpose(out["local_dist"]["scale"], (1, 0, 2)),
                        scale_ref, atol=1e-4, rtol=1e-4)
    print("KERNEL_OK")
</pallas_src>

<mosaic_0001>
module attributes {stable_mosaic.version = 11 : i64} {
  func.func @_lvae_kernel(%arg0: i32, %arg1: memref<1x16x8xf32, #tpu.memory_space<vmem>>, %arg2: memref<8x32xf32, #tpu.memory_space<vmem>>, %arg3: memref<1x32xf32, #tpu.memory_space<vmem>>, %arg4: memref<32x32xf32, #tpu.memory_space<vmem>>, %arg5: memref<1x32xf32, #tpu.memory_space<vmem>>, %arg6: memref<32x8xf32, #tpu.memory_space<vmem>>, %arg7: memref<1x8xf32, #tpu.memory_space<vmem>>, %arg8: memref<8x32xf32, #tpu.memory_space<vmem>>, %arg9: memref<1x32xf32, #tpu.memory_space<vmem>>, %arg10: memref<32x32xf32, #tpu.memory_space<vmem>>, %arg11: memref<1x32xf32, #tpu.memory_space<vmem>>, %arg12: memref<32x8xf32, #tpu.memory_space<vmem>>, %arg13: memref<1x8xf32, #tpu.memory_space<vmem>>, %arg14: memref<1x8xf32, #tpu.memory_space<vmem>>, %arg15: memref<1x8xf32, #tpu.memory_space<vmem>>, %arg16: memref<1x16x8xf32, #tpu.memory_space<vmem>>, %arg17: memref<1x16x8xf32, #tpu.memory_space<vmem>>) attributes {dimension_semantics = [#tpu.dimension_semantics<parallel>], iteration_bounds = array<i64: 2>, scalar_prefetch = 0 : i64, scratch_operands = 0 : i64, tpu.core_type = #tpu.core_type<tc>, window_params = [{transform_indices = @transform_0, window_bounds = array<i64: 1, 16, 8>}, {pipeline_mode = #tpu.pipeline_mode<synchronous>, transform_indices = @transform_1, window_bounds = array<i64: 8, 32>}, {pipeline_mode = #tpu.pipeline_mode<synchronous>, transform_indices = @transform_2, window_bounds = array<i64: 1, 32>}, {pipeline_mode = #tpu.pipeline_mode<synchronous>, transform_indices = @transform_3, window_bounds = array<i64: 32, 32>}, {pipeline_mode = #tpu.pipeline_mode<synchronous>, transform_indices = @transform_4, window_bounds = array<i64: 1, 32>}, {pipeline_mode = #tpu.pipeline_mode<synchronous>, transform_indices = @transform_5, window_bounds = array<i64: 32, 8>}, {pipeline_mode = #tpu.pipeline_mode<synchronous>, transform_indices = @transform_6, window_bounds = array<i64: 1, 8>}, {pipeline_mode = #tpu.pipeline_mode<synchronous>, transform_indices = @transform_7, window_bounds = array<i64: 8, 32>}, {pipeline_mode = #tpu.pipeline_mode<synchronous>, transform_indices = @transform_8, window_bounds = array<i64: 1, 32>}, {pipeline_mode = #tpu.pipeline_mode<synchronous>, transform_indices = @transform_9, window_bounds = array<i64: 32, 32>}, {pipeline_mode = #tpu.pipeline_mode<synchronous>, transform_indices = @transform_10, window_bounds = array<i64: 1, 32>}, {pipeline_mode = #tpu.pipeline_mode<synchronous>, transform_indices = @transform_11, window_bounds = array<i64: 32, 8>}, {pipeline_mode = #tpu.pipeline_mode<synchronous>, transform_indices = @transform_12, window_bounds = array<i64: 1, 8>}, {pipeline_mode = #tpu.pipeline_mode<synchronous>, transform_indices = @transform_13, window_bounds = array<i64: 1, 8>}, {pipeline_mode = #tpu.pipeline_mode<synchronous>, transform_indices = @transform_14, window_bounds = array<i64: 1, 8>}, {transform_indices = @transform_15, window_bounds = array<i64: 1, 16, 8>}, {transform_indices = @transform_16, window_bounds = array<i64: 1, 16, 8>}]} {
    %c0 = arith.constant 0 : index
    %c0_0 = arith.constant 0 : index
    %c0_1 = arith.constant 0 : index
    %0 = vector.load %arg1[%c0, %c0_0, %c0_1] : memref<1x16x8xf32, #tpu.memory_space<vmem>>, vector<1x16x8xf32>
    %cst = arith.constant dense<0.000000e+00> : vector<1x8xf32>
    %1 = vector.multi_reduction <add>, %0, %cst [1] : vector<1x16x8xf32> to vector<1x8xf32>
    %2 = vector.shape_cast %1 : vector<1x8xf32> to vector<1x1x8xf32>
    %cst_2 = arith.constant 1.600000e+01 : f32
    %3 = vector.broadcast %cst_2 : f32 to vector<1x1x8xf32>
    %4 = arith.divf %2, %3 : vector<1x1x8xf32>
    %5 = vector.broadcast %4 : vector<1x1x8xf32> to vector<1x16x8xf32>
    %6 = arith.subf %0, %5 : vector<1x16x8xf32>
    %7 = arith.mulf %6, %6 : vector<1x16x8xf32>
    %cst_3 = arith.constant dense<0.000000e+00> : vector<1x8xf32>
    %8 = vector.multi_reduction <add>, %7, %cst_3 [1] : vector<1x16x8xf32> to vector<1x8xf32>
    %9 = vector.shape_cast %8 : vector<1x8xf32> to vector<1x1x8xf32>
    %cst_4 = arith.constant 1.600000e+01 : f32
    %10 = vector.broadcast %cst_4 : f32 to vector<1x1x8xf32>
    %11 = arith.divf %9, %10 : vector<1x1x8xf32>
    %cst_5 = arith.constant 9.99999974E-6 : f32
    %12 = vector.broadcast %cst_5 : f32 to vector<1x1x8xf32>
    %13 = arith.addf %11, %12 : vector<1x1x8xf32>
    %14 = math.sqrt %13 : vector<1x1x8xf32>
    %15 = vector.broadcast %4 : vector<1x1x8xf32> to vector<1x16x8xf32>
    %16 = arith.subf %0, %15 : vector<1x16x8xf32>
    %17 = vector.broadcast %14 : vector<1x1x8xf32> to vector<1x16x8xf32>
    %18 = arith.divf %16, %17 : vector<1x16x8xf32>
    %19 = vector.shape_cast %18 : vector<1x16x8xf32> to vector<16x8xf32>
    %c0_6 = arith.constant 0 : index
    %c0_7 = arith.constant 0 : index
    %20 = vector.load %arg14[%c0_6, %c0_7] : memref<1x8xf32, #tpu.memory_space<vmem>>, vector<1x8xf32>
    %21 = vector.broadcast %20 : vector<1x8xf32> to vector<16x8xf32>
    %22 = arith.mulf %19, %21 : vector<16x8xf32>
    %c0_8 = arith.constant 0 : index
    %c0_9 = arith.constant 0 : index
    %23 = vector.load %arg15[%c0_8, %c0_9] : memref<1x8xf32, #tpu.memory_space<vmem>>, vector<1x8xf32>
    %24 = vector.broadcast %23 : vector<1x8xf32> to vector<16x8xf32>
    %25 = arith.addf %22, %24 : vector<16x8xf32>
    %c0_10 = arith.constant 0 : index
    %c0_11 = arith.constant 0 : index
    %26 = vector.load %arg2[%c0_10, %c0_11] : memref<8x32xf32, #tpu.memory_space<vmem>>, vector<8x32xf32>
    %cst_12 = arith.constant dense<0.000000e+00> : vector<16x32xf32>
    %27 = tpu.matmul %25, %26, %cst_12 {dimension_numbers = #tpu.dot_dimension_numbers<[1], [0], [0], [1], [0, 0, 1, 1], [], []>} : vector<16x8xf32>, vector<8x32xf32>, vector<16x32xf32> -> vector<16x32xf32>
    %c0_13 = arith.constant 0 : index
    %c0_14 = arith.constant 0 : index
    %28 = vector.load %arg3[%c0_13, %c0_14] : memref<1x32xf32, #tpu.memory_space<vmem>>, vector<1x32xf32>
    %29 = vector.broadcast %28 : vector<1x32xf32> to vector<16x32xf32>
    %30 = arith.addf %27, %29 : vector<16x32xf32>
    %cst_15 = arith.constant 0.000000e+00 : f32
    %31 = vector.broadcast %cst_15 : f32 to vector<16x32xf32>
    %32 = arith.maximumf %30, %31 : vector<16x32xf32>
    %c0_16 = arith.constant 0 : index
    %c0_17 = arith.constant 0 : index
    %33 = vector.load %arg4[%c0_16, %c0_17] : memref<32x32xf32, #tpu.memory_space<vmem>>, vector<32x32xf32>
    %cst_18 = arith.constant dense<0.000000e+00> : vector<16x32xf32>
    %34 = tpu.matmul %32, %33, %cst_18 {dimension_numbers = #tpu.dot_dimension_numbers<[1], [0], [0], [1], [0, 0, 1, 1], [], []>} : vector<16x32xf32>, vector<32x32xf32>, vector<16x32xf32> -> vector<16x32xf32>
    %c0_19 = arith.constant 0 : index
    %c0_20 = arith.constant 0 : index
    %35 = vector.load %arg5[%c0_19, %c0_20] : memref<1x32xf32, #tpu.memory_space<vmem>>, vector<1x32xf32>
    %36 = vector.broadcast %35 : vector<1x32xf32> to vector<16x32xf32>
    %37 = arith.addf %34, %36 : vector<16x32xf32>
    %cst_21 = arith.constant 0.000000e+00 : f32
    %38 = vector.broadcast %cst_21 : f32 to vector<16x32xf32>
    %39 = arith.maximumf %37, %38 : vector<16x32xf32>
    %c0_22 = arith.constant 0 : index
    %c0_23 = arith.constant 0 : index
    %40 = vector.load %arg6[%c0_22, %c0_23] : memref<32x8xf32, #tpu.memory_space<vmem>>, vector<32x8xf32>
    %cst_24 = arith.constant dense<0.000000e+00> : vector<16x8xf32>
    %41 = tpu.matmul %39, %40, %cst_24 {dimension_numbers = #tpu.dot_dimension_numbers<[1], [0], [0], [1], [0, 0, 1, 1], [], []>} : vector<16x32xf32>, vector<32x8xf32>, vector<16x8xf32> -> vector<16x8xf32>
    %c0_25 = arith.constant 0 : index
    %c0_26 = arith.constant 0 : index
    %42 = vector.load %arg7[%c0_25, %c0_26] : memref<1x8xf32, #tpu.memory_space<vmem>>, vector<1x8xf32>
    %43 = vector.broadcast %42 : vector<1x8xf32> to vector<16x8xf32>
    %44 = arith.addf %41, %43 : vector<16x8xf32>
    %45 = tpu.iota {dimensions = array<i32: 1>} : vector<16x8xi32>
    %c4_i32 = arith.constant 4 : i32
    %46 = vector.broadcast %c4_i32 : i32 to vector<16x8xi32>
    %47 = arith.cmpi sge, %45, %46 : vector<16x8xi32>
    %cst_27 = arith.constant 0.000000e+00 : f32
    %48 = vector.broadcast %cst_27 : f32 to vector<16x8xf32>
    %49 = arith.maximumf %44, %48 : vector<16x8xf32>
    %50 = vector.broadcast %cst_27 : f32 to vector<16x8xf32>
    %51 = arith.subf %44, %50 : vector<16x8xf32>
    %52 = arith.cmpf one, %51, %51 : vector<16x8xf32>
    %53 = vector.broadcast %cst_27 : f32 to vector<16x8xf32>
    %54 = arith.addf %44, %53 : vector<16x8xf32>
    %55 = math.absf %51 : vector<16x8xf32>
    %cst_28 = arith.constant 0.000000e+00 : f32
    %56 = vector.broadcast %cst_28 : f32 to vector<16x8xf32>
    %57 = arith.subf %56, %55 : vector<16x8xf32>
    %58 = math.exp %57 : vector<16x8xf32>
    %59 = math.log1p %58 : vector<16x8xf32>
    %60 = arith.addf %49, %59 : vector<16x8xf32>
    %61 = arith.select %52, %54, %60 : vector<16x8xi1>, vector<16x8xf32>
    %62 = arith.select %47, %61, %44 : vector<16x8xi1>, vector<16x8xf32>
    %c0_29 = arith.constant 0 : index
    %c0_30 = arith.constant 0 : index
    %63 = vector.load %arg8[%c0_29, %c0_30] : memref<8x32xf32, #tpu.memory_space<vmem>>, vector<8x32xf32>
    %cst_31 = arith.constant dense<0.000000e+00> : vector<16x32xf32>
    %64 = tpu.matmul %44, %63, %cst_31 {dimension_numbers = #tpu.dot_dimension_numbers<[1], [0], [0], [1], [0, 0, 1, 1], [], []>} : vector<16x8xf32>, vector<8x32xf32>, vector<16x32xf32> -> vector<16x32xf32>
    %c0_32 = arith.constant 0 : index
    %c0_33 = arith.constant 0 : index
    %65 = vector.load %arg9[%c0_32, %c0_33] : memref<1x32xf32, #tpu.memory_space<vmem>>, vector<1x32xf32>
    %66 = vector.broadcast %65 : vector<1x32xf32> to vector<16x32xf32>
    %67 = arith.addf %64, %66 : vector<16x32xf32>
    %cst_34 = arith.constant 0.000000e+00 : f32
    %68 = vector.broadcast %cst_34 : f32 to vector<16x32xf32>
    %69 = arith.maximumf %67, %68 : vector<16x32xf32>
    %c0_35 = arith.constant 0 : index
    %c0_36 = arith.constant 0 : index
    %70 = vector.load %arg10[%c0_35, %c0_36] : memref<32x32xf32, #tpu.memory_space<vmem>>, vector<32x32xf32>
    %cst_37 = arith.constant dense<0.000000e+00> : vector<16x32xf32>
    %71 = tpu.matmul %69, %70, %cst_37 {dimension_numbers = #tpu.dot_dimension_numbers<[1], [0], [0], [1], [0, 0, 1, 1], [], []>} : vector<16x32xf32>, vector<32x32xf32>, vector<16x32xf32> -> vector<16x32xf32>
    %c0_38 = arith.constant 0 : index
    %c0_39 = arith.constant 0 : index
    %72 = vector.load %arg11[%c0_38, %c0_39] : memref<1x32xf32, #tpu.memory_space<vmem>>, vector<1x32xf32>
    %73 = vector.broadcast %72 : vector<1x32xf32> to vector<16x32xf32>
    %74 = arith.addf %71, %73 : vector<16x32xf32>
    %cst_40 = arith.constant 0.000000e+00 : f32
    %75 = vector.broadcast %cst_40 : f32 to vector<16x32xf32>
    %76 = arith.maximumf %74, %75 : vector<16x32xf32>
    %c0_41 = arith.constant 0 : index
    %c0_42 = arith.constant 0 : index
    %77 = vector.load %arg12[%c0_41, %c0_42] : memref<32x8xf32, #tpu.memory_space<vmem>>, vector<32x8xf32>
    %cst_43 = arith.constant dense<0.000000e+00> : vector<16x8xf32>
    %78 = tpu.matmul %76, %77, %cst_43 {dimension_numbers = #tpu.dot_dimension_numbers<[1], [0], [0], [1], [0, 0, 1, 1], [], []>} : vector<16x32xf32>, vector<32x8xf32>, vector<16x8xf32> -> vector<16x8xf32>
    %c0_44 = arith.constant 0 : index
    %c0_45 = arith.constant 0 : index
    %79 = vector.load %arg13[%c0_44, %c0_45] : memref<1x8xf32, #tpu.memory_space<vmem>>, vector<1x8xf32>
    %80 = vector.broadcast %79 : vector<1x8xf32> to vector<16x8xf32>
    %81 = arith.addf %78, %80 : vector<16x8xf32>
    %c0_46 = arith.constant 0 : index
    %c0_47 = arith.constant 0 : index
    %82 = vector.load %arg15[%c0_46, %c0_47] : memref<1x8xf32, #tpu.memory_space<vmem>>, vector<1x8xf32>
    %83 = vector.broadcast %82 : vector<1x8xf32> to vector<16x8xf32>
    %84 = arith.subf %81, %83 : vector<16x8xf32>
    %c0_48 = arith.constant 0 : index
    %c0_49 = arith.constant 0 : index
    %85 = vector.load %arg14[%c0_48, %c0_49] : memref<1x8xf32, #tpu.memory_space<vmem>>, vector<1x8xf32>
    %cst_50 = arith.constant 1.000000e-10 : f32
    %86 = vector.broadcast %cst_50 : f32 to vector<1x8xf32>
    %87 = arith.addf %85, %86 : vector<1x8xf32>
    %88 = vector.broadcast %87 : vector<1x8xf32> to vector<16x8xf32>
    %89 = arith.divf %84, %88 : vector<16x8xf32>
    %90 = vector.shape_cast %89 : vector<16x8xf32> to vector<1x16x8xf32>
    %91 = vector.broadcast %14 : vector<1x1x8xf32> to vector<1x16x8xf32>
    %92 = arith.mulf %90, %91 : vector<1x16x8xf32>
    %93 = vector.broadcast %4 : vector<1x1x8xf32> to vector<1x16x8xf32>
    %94 = arith.addf %92, %93 : vector<1x16x8xf32>
    %c0_51 = arith.constant 0 : index
    %c0_52 = arith.constant 0 : index
    %c0_53 = arith.constant 0 : index
    %95 = vector.load %arg16[%c0_51, %c0_52, %c0_53] : memref<1x16x8xf32, #tpu.memory_space<vmem>>, vector<1x16x8xf32>
    tpu.vector_store %arg16[%c0_51, %c0_52, %c0_53], %94 {strides = array<i32>} : memref<1x16x8xf32, #tpu.memory_space<vmem>>, vector<1x16x8xf32>,
    %96 = vector.shape_cast %62 : vector<16x8xf32> to vector<1x16x8xf32>
    %c0_54 = arith.constant 0 : index
    %c0_55 = arith.constant 0 : index
    %c0_56 = arith.constant 0 : index
    %97 = vector.load %arg17[%c0_54, %c0_55, %c0_56] : memref<1x16x8xf32, #tpu.memory_space<vmem>>, vector<1x16x8xf32>
    tpu.vector_store %arg17[%c0_54, %c0_55, %c0_56], %96 {strides = array<i32>} : memref<1x16x8xf32, #tpu.memory_space<vmem>>, vector<1x16x8xf32>,
    return
  }
  func.func @transform_0(%arg0: i32) -> (i32, i32, i32) {
    %c0_i32 = arith.constant 0 : i32
    %c0_i32_0 = arith.constant 0 : i32
    %c0_i32_1 = arith.constant 0 : i32
    return %arg0, %c0_i32, %c0_i32_0 : i32, i32, i32
  }
  func.func @transform_1(%arg0: i32) -> (i32, i32) {
    %c0_i32 = arith.constant 0 : i32
    %c0_i32_0 = arith.constant 0 : i32
    %c0_i32_1 = arith.constant 0 : i32
    return %c0_i32, %c0_i32_0 : i32, i32
  }
  func.func @transform_2(%arg0: i32) -> (i32, i32) {
    %c0_i32 = arith.constant 0 : i32
    %c0_i32_0 = arith.constant 0 : i32
    %c0_i32_1 = arith.constant 0 : i32
    return %c0_i32, %c0_i32_0 : i32, i32
  }
  func.func @transform_3(%arg0: i32) -> (i32, i32) {
    %c0_i32 = arith.constant 0 : i32
    %c0_i32_0 = arith.constant 0 : i32
    %c0_i32_1 = arith.constant 0 : i32
    return %c0_i32, %c0_i32_0 : i32, i32
  }
  func.func @transform_4(%arg0: i32) -> (i32, i32) {
    %c0_i32 = arith.constant 0 : i32
    %c0_i32_0 = arith.constant 0 : i32
    %c0_i32_1 = arith.constant 0 : i32
    return %c0_i32, %c0_i32_0 : i32, i32
  }
  func.func @transform_5(%arg0: i32) -> (i32, i32) {
    %c0_i32 = arith.constant 0 : i32
    %c0_i32_0 = arith.constant 0 : i32
    %c0_i32_1 = arith.constant 0 : i32
    return %c0_i32, %c0_i32_0 : i32, i32
  }
  func.func @transform_6(%arg0: i32) -> (i32, i32) {
    %c0_i32 = arith.constant 0 : i32
    %c0_i32_0 = arith.constant 0 : i32
    %c0_i32_1 = arith.constant 0 : i32
    return %c0_i32, %c0_i32_0 : i32, i32
  }
  func.func @transform_7(%arg0: i32) -> (i32, i32) {
    %c0_i32 = arith.constant 0 : i32
    %c0_i32_0 = arith.constant 0 : i32
    %c0_i32_1 = arith.constant 0 : i32
    return %c0_i32, %c0_i32_0 : i32, i32
  }
  func.func @transform_8(%arg0: i32) -> (i32, i32) {
    %c0_i32 = arith.constant 0 : i32
    %c0_i32_0 = arith.constant 0 : i32
    %c0_i32_1 = arith.constant 0 : i32
    return %c0_i32, %c0_i32_0 : i32, i32
  }
  func.func @transform_9(%arg0: i32) -> (i32, i32) {
    %c0_i32 = arith.constant 0 : i32
    %c0_i32_0 = arith.constant 0 : i32
    %c0_i32_1 = arith.constant 0 : i32
    return %c0_i32, %c0_i32_0 : i32, i32
  }
  func.func @transform_10(%arg0: i32) -> (i32, i32) {
    %c0_i32 = arith.constant 0 : i32
    %c0_i32_0 = arith.constant 0 : i32
    %c0_i32_1 = arith.constant 0 : i32
    return %c0_i32, %c0_i32_0 : i32, i32
  }
  func.func @transform_11(%arg0: i32) -> (i32, i32) {
    %c0_i32 = arith.constant 0 : i32
    %c0_i32_0 = arith.constant 0 : i32
    %c0_i32_1 = arith.constant 0 : i32
    return %c0_i32, %c0_i32_0 : i32, i32
  }
  func.func @transform_12(%arg0: i32) -> (i32, i32) {
    %c0_i32 = arith.constant 0 : i32
    %c0_i32_0 = arith.constant 0 : i32
    %c0_i32_1 = arith.constant 0 : i32
    return %c0_i32, %c0_i32_0 : i32, i32
  }
  func.func @transform_13(%arg0: i32) -> (i32, i32) {
    %c0_i32 = arith.constant 0 : i32
    %c0_i32_0 = arith.constant 0 : i32
    %c0_i32_1 = arith.constant 0 : i32
    return %c0_i32, %c0_i32_0 : i32, i32
  }
  func.func @transform_14(%arg0: i32) -> (i32, i32) {
    %c0_i32 = arith.constant 0 : i32
    %c0_i32_0 = arith.constant 0 : i32
    %c0_i32_1 = arith.constant 0 : i32
    return %c0_i32, %c0_i32_0 : i32, i32
  }
  func.func @transform_15(%arg0: i32) -> (i32, i32, i32) {
    %c0_i32 = arith.constant 0 : i32
    %c0_i32_0 = arith.constant 0 : i32
    %c0_i32_1 = arith.constant 0 : i32
    return %arg0, %c0_i32, %c0_i32_0 : i32, i32, i32
  }
  func.func @transform_16(%arg0: i32) -> (i32, i32, i32) {
    %c0_i32 = arith.constant 0 : i32
    %c0_i32_0 = arith.constant 0 : i32
    %c0_i32_1 = arith.constant 0 : i32
    return %arg0, %c0_i32, %c0_i32_0 : i32, i32, i32
  }
}

</mosaic_0001>

<bundles_post_ra>
// kernel: tpu_custom_call.1
= control target key start
LH: loop header
LB: loop body
LE: loop exit
PB: predicated region body
PF: predicated region fallthrough
CT: control target
= control target key end

     0   :  { %s1562_s21 = smov 0   ;;  %s1707_s0 = inlined_call_operand.vmem [shape: f32[2,16,8], index: 0, kind: input, shape index: {}]   ;;  %s1708_s1 = inlined_call_operand.vmem [shape: f32[8,32], index: 1, kind: input, shape index: {}]   ;;  %s1709_s2 = inlined_call_operand.vmem [shape: f32[1,32], index: 2, kind: input, shape index: {}]   ;;  %s1710_s3 = inlined_call_operand.vmem [shape: f32[32,32], index: 3, kind: input, shape index: {}]   ;;  %s1711_s4 = inlined_call_operand.vmem [shape: f32[1,32], index: 4, kind: input, shape index: {}]   ;;  %s1712_s5 = inlined_call_operand.vmem [shape: f32[32,8], index: 5, kind: input, shape index: {}]   ;;  %s1713_s6 = inlined_call_operand.vmem [shape: f32[1,8], index: 6, kind: input, shape index: {}]   ;;  %s1714_s7 = inlined_call_operand.vmem [shape: f32[8,32], index: 7, kind: input, shape index: {}]   ;;  %s1715_s8 = inlined_call_operand.vmem [shape: f32[1,32], index: 8, kind: input, shape index: {}]   ;;  %s1716_s9 = inlined_call_operand.vmem [shape: f32[32,32], index: 9, kind: input, shape index: {}]   ;;  %s1717_s10 = inlined_call_operand.vmem [shape: f32[1,32], index: 10, kind: input, shape index: {}]   ;;  %s1718_s11 = inlined_call_operand.vmem [shape: f32[32,8], index: 11, kind: input, shape index: {}]   ;;  %s1719_s12 = inlined_call_operand.vmem [shape: f32[1,8], index: 12, kind: input, shape index: {}]   ;;  %s1720_s13 = inlined_call_operand.vmem [shape: f32[1,8], index: 13, kind: input, shape index: {}]   ;;  %s1721_s14 = inlined_call_operand.vmem [shape: f32[1,8], index: 14, kind: input, shape index: {}]   ;;  %s1722_s15 = inlined_call_operand.vmem [shape: f32[2,16,8], index: 15, kind: output, shape index: {0}]   ;;  %s1723_s16 = inlined_call_operand.vmem [shape: f32[2,16,8], index: 16, kind: output, shape index: {1}]  }
   0x1   :  { %1724 = sst [smem:[#allocation2_spill]] %s1707_s0 }
   0x2 LB: > { %s1296_s22 = sadd.s32 4294967295, %s1475_s21   ;;  %p1300_p0 = scmp.ge.s32.totalorder %s1475_s21, 1  ;;  %s1475_s21 = sphi %s1562_s21, %s27_s21  }
   0x3   : > { %p465_p1 = scmp.lt.s32.totalorder %s1475_s21, 3 }
   0x5   : > { %p466_p2 = pnand %p1300_p0, %p465_p1 }
   0x6   : > { %v592_v0 = vld [vmem:[%s1708_s1] sm:$0xff] (!%p466_p2)  ;;  %p520_p3 = scmp.lt.s32.totalorder (!%p466_p2), %s1296_s22, 1  ;;  %v576_v1 = vlaneseq (!%p466_p2)  ;;  %v684_v4 = vld [vmem:[%s1710_s3 + $0x8] sm:$0xff] (!%p466_p2)  ;;  %vm537_vm0 = vcmask (!%p466_p2), 64512   ;;  %s1725_s19 = sld [smem:[#allocation2_spill]] (!%p466_p2)  ;;  %v685_v51 = vld [vmem:[%s1710_s3 + $0x10] sm:$0xff] (!%p466_p2) }
   0x7   : > { %469 = sbr.rel (%p466_p2) target bundleno = 1403 (0x57b), region = 80  ;;  %v683_v2 = vld [vmem:[%s1710_s3] sm:$0xff] (!%p466_p2)  ;;  %1361 = vmatprep.subr.mxu0 (!%p466_p2), %v592_v0  ;;  %v686_v52 = vld [vmem:[%s1710_s3 + $0x18] sm:$0xff] (!%p466_p2)  ;;  %v779_v55 = vld [vmem:[%s1712_s5 + $0x8] sm:$0xff] (!%p466_p2)  ;;  %vm694_vm3 = vcmask (!%p466_p2), 261120  }
   0x8   : > { %v574_v3 = vld [vmem:[%s1720_s13] sm:$0x1] (!%p466_p2)  ;;  %1362 = vmatpush3.msra.mxu0 (!%p466_p2), %v592_v0  ;;  %v577_v5 = vshrl.u32 (!%p466_p2), %v576_v1, 7  ;;  %v1415_v7 = vpack.c.bf16 (!%p466_p2), %v684_v4, %v683_v2  ;;  %v1419_v53 = vpack.c.bf16 (!%p466_p2), %v686_v52, %v685_v51  ;;  %v780_v0 = vld [vmem:[%s1712_s5 + $0x10] sm:$0xff] (!%p466_p2)  ;;  %v781_v2 = vld [vmem:[%s1712_s5 + $0x18] sm:$0xff] (!%p466_p2) }
   0x9   : > { %v1190_v6 = vadd.f32 (!%p466_p2), 1e-10, %v574_v3  ;;  %v1605_v46 = vld [vmem:[%s1721_s14] ss:$0 sm:$0xff] (!%p466_p2) }
   0xa   : > { %v578_v8 = vsub.s32 (!%p466_p2), 0, %v577_v5  ;;  %1416 = vmatprep.subr.bf16.mxu1 (!%p466_p2), %v1415_v7  ;;  %v778_v54 = vld [vmem:[%s1712_s5] sm:$0xff] (!%p466_p2) }
   0xb   : > { %1418 = vmatpush3.bf16.msra.mxu1 (!%p466_p2), %v1415_v7  ;;  %v1423_v56 = vpack.c.bf16 (!%p466_p2), %v779_v55, %v778_v54  ;;  %v1308_v57 = vld [vmem:[%s1709_s2] ss:$0 sm:$0xff] (!%p466_p2) }
   0xc   : > { %v1589_v11 = vrot.slane (!%p466_p2), %v1190_v6, %v578_v8  ;;  %v579_v42 = vrot.slane (!%p466_p2), %v574_v3, %v578_v8  ;;  %1420 = vmatprep.subr.bf16.mxu1 (!%p466_p2), %v1419_v53  ;;  %v1427_v3 = vpack.c.bf16 (!%p466_p2), %v781_v2, %v780_v0  ;;  %v1311_v4 = vld [vmem:[%s1711_s4] ss:$0 sm:$0xff] (!%p466_p2) }
   0xd   : > { %1424 = vmatprep.subr.bf16.mxu0 (!%p466_p2), %v1423_v56 }
   0xe   : > { %s1727_s22 = smov (!%p520_p3, %s1296_s22), 1 }
   0xf   : > { %s1583_s0 = sshll.u32 %s1727_s22, 4  ;;  %1422 = vmatpush3.bf16.msra.mxu1 %v1419_v53 }
  0x10   : > { %s524_s20 = scalar_lea.vmem %s1725_s19, %s1583_s0  ;;  %s534_s24 = scalar_lea.vmem %s1723_s16, %s1583_s0 }
  0x11   : > { %v535_v9 = vld [vmem:[%s524_s20] sm:$0xff]  ;;  %v536_v10 = vld [vmem:[%s524_s20 + $0x8] sm:$0xff]  ;;  %s529_s18 = scalar_lea.vmem %s1722_s15, %s1583_s0 }
  0x12   : > { %v538_v12 = vsel %vm537_vm0, %v535_v9, 0.0  ;;  %v539_v13 = vsel %vm537_vm0, %v536_v10, 0.0 }
  0x13   : > { %v540_v14 = vadd.f32 %v539_v13, %v538_v12  ;;  %v911_v12 = vld [vmem:[%s1714_s7] sm:$0xff] }
  0x14   : > { %1388 = vmatprep.subr.mxu1 %v911_v12  ;;  %v1002_v13 = vld [vmem:[%s1716_s9] sm:$0xff] }
  0x15   : > { %v541_v15 = vrot.slane %v540_v14, 4 }
  0x17   : > { %v542_v16 = vadd.f32 %v541_v15, %v540_v14  ;;  %v1003_v14 = vld [vmem:[%s1716_s9 + $0x8] sm:$0xff] }
  0x18   : > { %v1431_v15 = vpack.c.bf16 %v1003_v14, %v1002_v13 }
  0x19   : > { %v543_v17 = vrot.slane %v542_v16, 2 }
  0x1b   : > { %v544_v18 = vadd.f32 %v543_v17, %v542_v16  ;;  %v1314_v16 = vld [vmem:[%s1713_s6] ss:$0 sm:$0xff] }
  0x1d   : > { %v545_v19 = vrot.slane %v544_v18, 1 }
  0x1f   : > { %v546_v20 = vadd.f32 %v545_v19, %v544_v18 }
  0x21   : > { %v1593_v21 = vmul.f32 0.0625, %v546_v20 }
  0x23   : > { %v549_v22 = vsub.f32 %v535_v9, %v1593_v21  ;;  %v550_v23 = vsub.f32 %v536_v10, %v1593_v21 }
  0x25   : > { %v551_v24 = vmul.f32 %v549_v22, %v549_v22  ;;  %v552_v25 = vmul.f32 %v550_v23, %v550_v23 }
  0x27   : > { %v553_v26 = vsel %vm537_vm0, %v551_v24, 0.0  ;;  %v554_v27 = vsel %vm537_vm0, %v552_v25, 0.0 }
  0x28   : > { %v555_v28 = vadd.f32 %v554_v27, %v553_v26 }
  0x2a   : > { %v556_v29 = vrot.slane %v555_v28, 4 }
  0x2c   : > { %v557_v30 = vadd.f32 %v556_v29, %v555_v28 }
  0x2e   : > { %v558_v31 = vrot.slane %v557_v30, 2 }
  0x30   : > { %v559_v32 = vadd.f32 %v558_v31, %v557_v30 }
  0x32   : > { %v560_v33 = vrot.slane %v559_v32, 1 }
  0x34   : > { %v561_v34 = vadd.f32 %v560_v33, %v559_v32 }
  0x36   : > { %v562_v35 = vmul.f32 0.0625, %v561_v34 }
  0x38   : > { %v563_v36 = vadd.f32 1e-05, %v562_v35 }
  0x3a   : > { %1455 = vrsqrt.f32 %v563_v36  ;;  %vm566_vm1 = vcmp.eq.f32.partialorder %v563_v36, inf  ;;  %v569_v38 = vand.u32 2147483648, %v563_v36  ;;  %vm568_vm2 = vcmp.eq.f32.partialorder %v563_v36, 0.0 }
  0x44   : > { %v1456_v37 = vpop.eup %1455 }
  0x45   : > { %v565_v39 = vmul.f32 %v1456_v37, %v563_v36 }
  0x47   : > { %v567_v40 = vsel %vm566_vm1, %v563_v36, %v565_v39  ;;  %v871_v39 = vand.u32 127, %v576_v1 }
  0x48   : > { %v1599_v41 = vsel %vm568_vm2, %v569_v38, %v567_v40 }
  0x49   : > { %1457 = vrcp.f32 %v1599_v41  ;;  %vm872_vm6 = vcmp.ge.s32.totalorder %v871_v39, 4 }
  0x53   : > { %v1458_v43 = vpop.eup %1457 }
  0x54   : > { %v572_v44 = vmul.f32 %v1458_v43, %v549_v22  ;;  %v573_v45 = vmul.f32 %v1458_v43, %v550_v23 }
  0x56   : > { %v581_v47 = vmul.f32 %v579_v42, %v572_v44  ;;  %v582_v48 = vmul.f32 %v579_v42, %v573_v45 }
  0x58   : > { %v590_v49 = vadd.f32 %v1605_v46, %v581_v47  ;;  %v591_v50 = vadd.f32 %v1605_v46, %v582_v48 }
  0x5a   : > { %1363 = vmatprep.mubr.msk.f32.mxu0 %vm537_vm0, %v590_v49 }
  0x5b   : > { %1364 = vmatmul.mubr.msk.f32.vlgmr.msra.gmra.mrb[0].mxu0 %vm537_vm0, %v591_v50 }
  0x5c   : > { %1426 = vmatpush3.bf16.msra.mxu0 %v1423_v56  ;;  %v1004_v56 = vld [vmem:[%s1716_s9 + $0x10] sm:$0xff] }
  0x5d   : > { %1428 = vmatprep.subr.bf16.mxu0 %v1427_v3 }
  0x60   : > { %1430 = vmatpush3.bf16.msra.mxu0 %v1427_v3 }
  0x61   : > { %1432 = vmatprep.subr.bf16.mxu0 %v1431_v15 }
 0x12e   : > { %v1365_v58 = vpop.f32.mrb[0].mxu0 }
 0x12f   : > { %v678_v59 = vadd.f32 %v1365_v58, %v1308_v57  ;;  %v672_v60 = vpop.f32.mrb[1].mxu0 }
 0x130   : > { %v673_v61 = vadd.f32 %v1308_v57, %v672_v60  ;;  %v1005_v57 = vld [vmem:[%s1716_s9 + $0x18] sm:$0xff]  ;;  %v1097_v60 = vld [vmem:[%s1718_s11 + $0x8] sm:$0xff] }
 0x131   : > { %v682_v63 = vmax.f32 %v678_v59, 0.0  ;;  %v1435_v58 = vpack.c.bf16 %v1005_v57, %v1004_v56  ;;  %v1096_v59 = vld [vmem:[%s1718_s11] sm:$0xff] }
 0x132   : > { %v681_v62 = vmax.f32 %v673_v61, 0.0  ;;  %v1439_v61 = vpack.c.bf16 %v1097_v60, %v1096_v59 }
 0x134   : > { %1374 = vmatprep.mubr.msk.f32.mxu1 %vm694_vm3, %v681_v62  ;;  %v1317_v62 = vld [vmem:[%s1715_s8] ss:$0 sm:$0xff] }
 0x135   : > { %1375 = vmatmul.mubr.msk.f32.vlgmr.msra.gmra.mrb[0].mxu1 %vm694_vm3, %v682_v63 }
 0x136   : > { %1389 = vmatpush3.msra.mxu1 %v911_v12 }
 0x137   : > { %1440 = vmatprep.subr.bf16.mxu1 %v1439_v61 }
 0x208   : > { %v1376_v5 = vpop.f32.mrb[0].mxu1 }
 0x209   : > { %v773_v6 = vadd.f32 %v1376_v5, %v1311_v4  ;;  %v767_v7 = vpop.f32.mrb[1].mxu1 }
 0x20a   : > { %v768_v8 = vadd.f32 %v1311_v4, %v767_v7  ;;  %v1099_v7 = vld [vmem:[%s1718_s11 + $0x18] sm:$0xff] }
 0x20b   : > { %v777_v10 = vmax.f32 %v773_v6, 0.0  ;;  %v1098_v6 = vld [vmem:[%s1718_s11 + $0x10] sm:$0xff] }
 0x20c   : > { %v776_v9 = vmax.f32 %v768_v8, 0.0  ;;  %v1443_v8 = vpack.c.bf16 %v1099_v7, %v1098_v6 }
 0x20e   : > { %1385 = vmatprep.mubr.msk.f32.mxu0 %vm694_vm3, %v776_v9  ;;  %v1320_v9 = vld [vmem:[%s1717_s10] ss:$0 sm:$0xff] }
 0x20f   : > { %1386 = vmatmul.mubr.msk.f32.vlgmr.msra.gmra.mrb[2].mxu0 %vm694_vm3, %v777_v10 }
 0x210   : > { %1434 = vmatpush3.bf16.msra.mxu0 %v1431_v15 }
 0x211   : > { %1436 = vmatprep.subr.bf16.mxu0 %v1435_v58 }
 0x214   : > { %1438 = vmatpush3.bf16.msra.mxu0 %v1435_v58 }
 0x2e2   : > { %v1387_v17 = vpop.f32.mrb[2].mxu0 }
 0x2e3   : > { %v867_v18 = vadd.f32 %v1387_v17, %v1314_v16  ;;  %v861_v19 = vpop.f32.mrb[3].mxu0  ;;  %v1323_v17 = vld [vmem:[%s1719_s12] ss:$0 sm:$0xff] }
 0x2e4   : > { %v862_v20 = vadd.f32 %v1314_v16, %v861_v19 }
 0x2e5   : > { %v880_v22 = vand.u32 2147483647, %v867_v18  ;;  %v874_v44 = vmax.f32 %v867_v18, 0.0  ;;  %vm876_vm7 = vcmp.ne.f32.partialorder %v867_v18, %v867_v18 }
 0x2e6   : > { %v879_v23 = vand.u32 2147483647, %v862_v20  ;;  %1390 = vmatprep.mubr.msk.f32.mxu1 %vm537_vm0, %v862_v20  ;;  %v873_v49 = vmax.f32 %v862_v20, 0.0  ;;  %vm875_vm8 = vcmp.ne.f32.partialorder %v862_v20, %v862_v20 }
 0x2e7   : > { %v882_v24 = vsub.f32 0.0, %v880_v22  ;;  %1391 = vmatmul.mubr.msk.f32.vlgmr.msra.gmra.mrb[2].mxu1 %vm537_vm0, %v867_v18 }
 0x2e8   : > { %v881_v25 = vsub.f32 0.0, %v879_v23  ;;  %1442 = vmatpush3.bf16.msra.mxu1 %v1439_v61 }
 0x2e9   : > { %v885_v26 = vmul.f32 1.442695, %v882_v24  ;;  %1444 = vmatprep.subr.bf16.mxu1 %v1443_v8 }
 0x2ea   : > { %v883_v27 = vmul.f32 1.442695, %v881_v25 }
 0x2eb   : > { %1459 = vpow2.f32 %v885_v26 }
 0x2ec   : > { %1461 = vpow2.f32 %v883_v27  ;;  %1446 = vmatpush3.bf16.msra.mxu1 %v1443_v8 }
 0x2f5   : > { %v1460_v28 = vpop.eup %1459 }
 0x2f6   : > { %v1462_v29 = vpop.eup %1461  ;;  %v896_v30 = vadd.f32 1.0, %v1460_v28  ;;  %v899_v32 = vmul.f32 -0.5, %v1460_v28  ;;  %v902_v35 = vand.u32 2147483647, %v1460_v28 }
 0x2f7   : > { %v887_v31 = vadd.f32 1.0, %v1462_v29  ;;  %v890_v33 = vmul.f32 -0.5, %v1462_v29  ;;  %v893_v37 = vand.u32 2147483647, %v1462_v29 }
 0x2f8   : > { %1463 = vlog2.f32 %v896_v30  ;;  %v900_v34 = vadd.f32 1.0, %v899_v32  ;;  %vm903_vm4 = vcmp.lt.f32.partialorder %v902_v35, 0.0004427343 }
 0x2f9   : > { %1465 = vlog2.f32 %v887_v31  ;;  %v891_v36 = vadd.f32 1.0, %v890_v33  ;;  %vm894_vm5 = vcmp.lt.f32.partialorder %v893_v37, 0.0004427343 }
 0x2fa   : > { %v901_v43 = vmul.f32 %v1460_v28, %v900_v34  ;;  %1467 = vrcp.f32 %v1589_v11 }
 0x2fb   : > { %v892_v47 = vmul.f32 %v1462_v29, %v891_v36 }
 0x302   : > { %v1464_v38 = vpop.eup %1463 }
 0x303   : > { %v1466_v40 = vpop.eup %1465  ;;  %v898_v42 = vmul.f32 0.6931472, %v1464_v38 }
 0x304   : > { %v889_v45 = vmul.f32 0.6931472, %v1466_v40  ;;  %v1468_v22 = vpop.eup %1467 }
 0x305   : > { %v904_v48 = vsel %vm903_vm4, %v901_v43, %v898_v42 }
 0x306   : > { %v906_v50 = vadd.f32 %v904_v48, %v874_v44  ;;  %v895_v51 = vsel %vm894_vm5, %v892_v47, %v889_v45 }
 0x307   : > { %v905_v52 = vadd.f32 %v895_v51, %v873_v49 }
 0x308   : > { %v908_v1 = vsel %vm876_vm7, %v867_v18, %v906_v50 }
 0x309   : > { %v910_v53 = vsel %vm872_vm6, %v908_v1, %v867_v18  ;;  %v907_v54 = vsel %vm875_vm8, %v862_v20, %v905_v52 }
 0x30a   : > { %1207 = vst.msk [vmem:[%s534_s24 + $0x8] sm:$0xff] %vm537_vm0, %v910_v53  ;;  %v909_v55 = vsel %vm872_vm6, %v907_v54, %v862_v20 }
 0x30b   : > { %1206 = vst.msk [vmem:[%s534_s24] sm:$0xff] %vm537_vm0, %v909_v55 }
 0x3ba   : > { %v1392_v63 = vpop.f32.mrb[2].mxu1 }
 0x3bb   : > { %v997_v0 = vadd.f32 %v1392_v63, %v1317_v62  ;;  %v991_v2 = vpop.f32.mrb[3].mxu1 }
 0x3bc   : > { %v992_v3 = vadd.f32 %v1317_v62, %v991_v2 }
 0x3bd   : > { %v1001_v5 = vmax.f32 %v997_v0, 0.0 }
 0x3be   : > { %v1000_v4 = vmax.f32 %v992_v3, 0.0 }
 0x3c0   : > { %1401 = vmatprep.mubr.msk.f32.mxu0 %vm694_vm3, %v1000_v4 }
 0x3c1   : > { %1402 = vmatmul.mubr.msk.f32.vlgmr.msra.gmra.mrb[4].mxu0 %vm694_vm3, %v1001_v5 }
 0x494   : > { %v1403_v10 = vpop.f32.mrb[4].mxu0 }
 0x495   : > { %v1091_v12 = vadd.f32 %v1403_v10, %v1320_v9  ;;  %v1085_v13 = vpop.f32.mrb[5].mxu0 }
 0x496   : > { %v1086_v14 = vadd.f32 %v1320_v9, %v1085_v13 }
 0x497   : > { %v1095_v16 = vmax.f32 %v1091_v12, 0.0 }
 0x498   : > { %v1094_v15 = vmax.f32 %v1086_v14, 0.0 }
 0x49a   : > { %1412 = vmatprep.mubr.msk.f32.mxu1 %vm694_vm3, %v1094_v15 }
 0x49b   : > { %1413 = vmatmul.mubr.msk.f32.vlgmr.msra.gmra.mrb[4].mxu1 %vm694_vm3, %v1095_v16 }
 0x56e   : > { %v1414_v18 = vpop.f32.mrb[4].mxu1 }
 0x56f   : > { %v1185_v19 = vadd.f32 %v1414_v18, %v1323_v17  ;;  %v1179_v20 = vpop.f32.mrb[5].mxu1 }
 0x570   : > { %v1180_v23 = vadd.f32 %v1323_v17, %v1179_v20 }
 0x571   : > { %v1189_v24 = vsub.f32 %v1185_v19, %v1605_v46 }
 0x572   : > { %v1188_v25 = vsub.f32 %v1180_v23, %v1605_v46 }
 0x573   : > { %v1199_v26 = vmul.f32 %v1468_v22, %v1189_v24 }
 0x574   : > { %v1198_v27 = vmul.f32 %v1468_v22, %v1188_v25 }
 0x575   : > { %v1201_v28 = vmul.f32 %v1199_v26, %v1599_v41 }
 0x576   : > { %v1200_v11 = vmul.f32 %v1198_v27, %v1599_v41 }
 0x577   : > { %v1203_v29 = vadd.f32 %v1201_v28, %v1593_v21 }
 0x578   : > { %v1202_v30 = vadd.f32 %v1200_v11, %v1593_v21 }
 0x579   : > { %1205 = vst.msk [vmem:[%s529_s18 + $0x8] sm:$0xff] %vm537_vm0, %v1203_v29 }
 0x57a   : > { %1204 = vst.msk [vmem:[%s529_s18] sm:$0xff] %vm537_vm0, %v1202_v30 }
 0x57b PF: > { %s27_s21 = sadd.s32 1, %s1475_s21  }
 0x57c   : > { %p24_p4 = scmp.ge.s32.totalorder %s27_s21, 4  }
 0x57e   :  { %26 = sbr.rel (!%p24_p4) target bundleno = 2 (0x2), region = 122 }

</bundles_post_ra>
